<compile_context>
chip_gen: v7x
topology: tpu7x:2x2x1
jax: 0.10.0
libtpu: 0.0.40
codegen_flags: <defaults>
</compile_context>

<pallas_src>
import functools

import jax
import jax.numpy as jnp
from jax import lax
from jax.experimental import pallas as pl
from jax.experimental.pallas import tpu as pltpu

NUM_FEAT1 = 500    # senet154 head out (last_linear replaced by Linear(2048, 500))
NUM_FEAT2 = 1000   # resnet surrogate head out (num_classes=1000)
NUM_OUT = 500      # fc out_features

_LANE = 128
_SUBLANE = 8
_N_PAD = 512                        # NUM_OUT rounded up to a lane multiple
_X_TILE_BYTES = 12 * 1024 * 1024    # per-buffer budget for the streamed x tile


def _round_up(x, m):
    return (x + m - 1) // m * m


def _vmem_limit_bytes():
    # ~48 MiB on v7x (64 MiB physical per TC), 64 MiB on v5e/v6e (128 MiB).
    try:
        cap = pltpu.get_tpu_info().vmem_capacity_bytes
    except Exception:
        cap = 64 * 1024 * 1024
    return min(64 * 1024 * 1024, int(cap) * 3 // 4)


def _pick_b_tile(B):
    if B <= _SUBLANE:
        return B  # single batch tile; block dim == full output dim is legal
    # Multiple of 8, <= 128, and >= 2 tiles so both v7x TensorCores get work.
    return min(128, _round_up((B + 1) // 2, _SUBLANE))


def _pick_chw_tiles(C, HW, b_tile, itemsize):
    max_elems = max(_X_TILE_BYTES // (b_tile * itemsize), _SUBLANE * _LANE)
    if HW <= max_elems // _SUBLANE:
        hw_tile = HW                              # full extent: no pad, no mask
        c_cap = max_elems // HW
        if C <= c_cap:
            c_tile = C                            # full extent
        else:
            c_tile = max(_SUBLANE, (c_cap // _SUBLANE) * _SUBLANE)
    else:
        c_tile = C if C <= _SUBLANE else _SUBLANE
        hw_cap = max_elems // max(c_tile, 1)
        hw_tile = max(_LANE, (hw_cap // _LANE) * _LANE)
        if hw_tile >= HW:
            hw_tile = HW
    return c_tile, hw_tile


def _make_kernel(C, HW, c_tile, hw_tile, inv_hw):
    mask_c = (C % c_tile) != 0      # static: only emit the mask when a tail exists
    mask_hw = (HW % hw_tile) != 0

    def kernel(x_ref, w_ref, b_ref, o_ref, p_acc):
        # x_ref : [b_tile, c_tile, hw_tile]  input dtype (bf16 / f32), unpadded stream
        # w_ref : [c_tile, N_PAD]            bf16 folded heads + fc (zero-padded rows)
        # b_ref : [1, N_PAD]                 f32  fc bias (lane padded)
        # o_ref : [b_tile, N_PAD]            f32  resident across the C / HW axes
        # p_acc : [b_tile, c_tile]           f32  partial spatial sums (scratch)
        ci = pl.program_id(1)
        hi = pl.program_id(2)

        @pl.when(jnp.logical_and(ci == 0, hi == 0))
        def _init_out():
            o_ref[...] = jnp.broadcast_to(b_ref[...], o_ref.shape)

        @pl.when(hi == 0)
        def _init_gap():
            p_acc[...] = jnp.zeros_like(p_acc)

        xv = x_ref[...].astype(jnp.float32)
        if mask_c or mask_hw:
            valid = None
            if mask_c:
                cpos = lax.broadcasted_iota(jnp.int32, xv.shape, 1) + ci * c_tile
                valid = cpos < C
            if mask_hw:
                hpos = lax.broadcasted_iota(jnp.int32, xv.shape, 2) + hi * hw_tile
                hv = hpos < HW
                valid = hv if valid is None else jnp.logical_and(valid, hv)
            xv = jnp.where(valid, xv, 0.0)

        # Partial global-average-pool: accumulate the spatial sum in f32
        # (XLU/VPU work, off the critical HBM-DMA slot).
        p_acc[...] += jnp.sum(xv, axis=-1)

        @pl.when(hi == pl.num_programs(2) - 1)
        def _contract():
            lhs = (p_acc[...] * inv_hw).astype(w_ref.dtype)
            o_ref[...] += jnp.dot(lhs, w_ref[...],
                                  preferred_element_type=jnp.float32)

    return kernel


@functools.partial(jax.jit, static_argnames=("b_tile", "c_tile", "hw_tile"))
def senet_vol_forward(x_nchw, w1, w2, w_fc, b_fc, *,
                      b_tile=None, c_tile=None, hw_tile=None):
    """x_nchw: [B, C, H, W] (f32 or bf16); w1: [C, 500]; w2: [C, 1000];
    w_fc: [1500, 500] (fc.weight.T); b_fc: [500]."""
    B, C, H, W = x_nchw.shape
    HW = H * W

    # Fold surrogate heads + fc into one [C, 500] matrix (exact in f32: the
    # stages are purely linear).  The 1/(H*W) GAP scale is applied in-kernel.
    w_eff = jnp.dot(w1.astype(jnp.float32), w_fc[:NUM_FEAT1].astype(jnp.float32))
    w_eff = w_eff + jnp.dot(w2.astype(jnp.float32),
                            w_fc[NUM_FEAT1:].astype(jnp.float32))

    if b_tile is None:
        b_tile = _pick_b_tile(B)
    auto_c, auto_hw = _pick_chw_tiles(C, HW, b_tile, x_nchw.dtype.itemsize)
    if c_tile is None:
        c_tile = auto_c
    if hw_tile is None:
        hw_tile = auto_hw

    grid_b = pl.cdiv(B, b_tile)
    grid_c = pl.cdiv(C, c_tile)
    grid_hw = pl.cdiv(HW, hw_tile)
    b_pad = grid_b * b_tile
    c_pad = grid_c * c_tile

    # x is NOT padded / copied: reshape (B,C,H,W)->(B,C,HW) is free and the
    # kernel streams it in its original dtype.  Ragged tail blocks on the
    # contracted C / HW axes are masked in-kernel; ragged batch rows only
    # produce garbage output rows that get sliced off below.
    x3 = x_nchw.reshape(B, C, HW)

    # Only the tiny weight / bias get padded.
    w_p = jnp.pad(w_eff, ((0, c_pad - C), (0, _N_PAD - NUM_OUT))).astype(jnp.bfloat16)
    b_p = jnp.pad(b_fc.astype(jnp.float32), (0, _N_PAD - NUM_OUT)).reshape(1, _N_PAD)

    kernel = _make_kernel(C, HW, c_tile, hw_tile, 1.0 / float(HW))

    out_pad = pl.pallas_call(
        kernel,
        out_shape=jax.ShapeDtypeStruct((b_pad, _N_PAD), jnp.float32),
        grid_spec=pltpu.PrefetchScalarGridSpec(
            num_scalar_prefetch=0,
            grid=(grid_b, grid_c, grid_hw),
            in_specs=[
                pl.BlockSpec((b_tile, c_tile, hw_tile),
                             lambda bi, ci, hi: (bi, ci, hi)),
                pl.BlockSpec((c_tile, _N_PAD), lambda bi, ci, hi: (ci, 0)),
                pl.BlockSpec((1, _N_PAD), lambda bi, ci, hi: (0, 0)),
            ],
            out_specs=pl.BlockSpec((b_tile, _N_PAD), lambda bi, ci, hi: (bi, 0)),
            scratch_shapes=[pltpu.VMEM((b_tile, c_tile), jnp.float32)],
        ),
        compiler_params=pltpu.CompilerParams(
            dimension_semantics=("parallel", "arbitrary", "arbitrary"),
            vmem_limit_bytes=_vmem_limit_bytes(),
        ),
    )(x3, w_p, b_p)

    return out_pad[:B, :NUM_OUT]


def reference_forward(x_nchw, w1, w2, w_fc, b_fc):
    """Pure-JAX reference mirroring the PyTorch forward."""
    p = jnp.mean(x_nchw.astype(jnp.float32), axis=(2, 3))   # GAP        [B, C]
    f1 = p @ w1                                             # senet154   [B, 500]
    f2 = p @ w2                                             # "resnet"   [B, 1000]
    feats = jnp.concatenate([f1, f2], axis=1)               # cat        [B, 1500]
    return feats @ w_fc + b_fc                              # fc         [B, 500]


def _make_params(key, C):
    k1, k2, kl, kb = jax.random.split(key, 4)
    w1 = jax.random.normal(k1, (C, NUM_FEAT1), dtype=jnp.float32) * 0.05
    w2 = jax.random.normal(k2, (C, NUM_FEAT2), dtype=jnp.float32) * 0.05
    w_fc = jax.random.normal(kl, (NUM_FEAT1 + NUM_FEAT2, NUM_OUT),
                             dtype=jnp.float32) * 0.02     # fc.weight.T
    b_fc = jax.random.normal(kb, (NUM_OUT,), dtype=jnp.float32) * 0.01
    return w1, w2, w_fc, b_fc


if __name__ == "__main__":
    key = jax.random.PRNGKey(0)
    k_a, k_b, kp = jax.random.split(key, 3)

    # --- Test 1: small module-shaped case (single-tile grid, f32 input). ---
    B, C, H, W = 2, 4, 16, 16
    x = jax.random.normal(k_a, (B, C, H, W), dtype=jnp.float32)
    w1, w2, w_fc, b_fc = _make_params(kp, C)

    out = jax.block_until_ready(senet_vol_forward(x, w1, w2, w_fc, b_fc))
    ref = reference_forward(x, w1, w2, w_fc, b_fc)
    assert out.shape == (B, NUM_OUT)
    # bf16 weight / LHS cast inside the kernel -> slightly looser tolerance.
    assert jnp.allclose(out, ref, atol=2e-3, rtol=2e-2), "mismatch vs reference (t1)"

    # --- Test 2: bf16 stream + forced C / HW tiling (exercises ragged batch
    #     blocks and the in-kernel tail masks). ---
    B2, C2, H2, W2 = 18, 20, 10, 20
    x2 = jax.random.normal(k_b, (B2, C2, H2, W2), dtype=jnp.float32).astype(jnp.bfloat16)
    w1b, w2b, w_fcb, b_fcb = _make_params(kp, C2)

    out2 = jax.block_until_ready(
        senet_vol_forward(x2, w1b, w2b, w_fcb, b_fcb, c_tile=8, hw_tile=128))
    ref2 = reference_forward(x2, w1b, w2b, w_fcb, b_fcb)
    assert out2.shape == (B2, NUM_OUT)
    assert jnp.allclose(out2, ref2, atol=2e-3, rtol=2e-2), "mismatch vs reference (t2)"

    print("KERNEL_OK")
</pallas_src>

<mosaic_0001>
module attributes {stable_mosaic.version = 11 : i64} {
  func.func @kernel(%arg0: i32, %arg1: i32, %arg2: i32, %arg3: memref<2x4x256xf32, #tpu.memory_space<vmem>>, %arg4: memref<4x512xbf16, #tpu.memory_space<vmem>>, %arg5: memref<1x512xf32, #tpu.memory_space<vmem>>, %arg6: memref<2x512xf32, #tpu.memory_space<vmem>>, %arg7: memref<2x4xf32, #tpu.memory_space<vmem>>) attributes {dimension_semantics = [#tpu.dimension_semantics<parallel>, #tpu.dimension_semantics<arbitrary>, #tpu.dimension_semantics<arbitrary>], iteration_bounds = array<i64: 1, 1, 1>, scalar_prefetch = 0 : i64, scratch_operands = 1 : i64, tpu.core_type = #tpu.core_type<tc>, window_params = [{transform_indices = @transform_0, window_bounds = array<i64: 2, 4, 256>}, {transform_indices = @transform_1, window_bounds = array<i64: 4, 512>}, {pipeline_mode = #tpu.pipeline_mode<synchronous>, transform_indices = @transform_2, window_bounds = array<i64: 1, 512>}, {transform_indices = @transform_3, window_bounds = array<i64: 2, 512>}]} {
    %c0_i32 = arith.constant 0 : i32
    %0 = arith.cmpi eq, %arg1, %c0_i32 : i32
    %c0_i32_0 = arith.constant 0 : i32
    %1 = arith.cmpi eq, %arg2, %c0_i32_0 : i32
    %2 = arith.andi %0, %1 : i1
    %3 = arith.extui %2 : i1 to i32
    %c0_i32_1 = arith.constant 0 : i32
    %4 = arith.cmpi ne, %3, %c0_i32_1 : i32
    scf.if %4 {
      %c0_12 = arith.constant 0 : index
      %c0_13 = arith.constant 0 : index
      %16 = vector.load %arg5[%c0_12, %c0_13] : memref<1x512xf32, #tpu.memory_space<vmem>>, vector<1x512xf32>
      %17 = vector.shape_cast %16 : vector<1x512xf32> to vector<1x512xf32>
      %18 = vector.broadcast %17 : vector<1x512xf32> to vector<2x512xf32>
      %c0_14 = arith.constant 0 : index
      %c0_15 = arith.constant 0 : index
      %19 = vector.load %arg6[%c0_14, %c0_15] : memref<2x512xf32, #tpu.memory_space<vmem>>, vector<2x512xf32>
      tpu.vector_store %arg6[%c0_14, %c0_15], %18 {strides = array<i32>} : memref<2x512xf32, #tpu.memory_space<vmem>>, vector<2x512xf32>,
    } else {
    }
    %c0_i32_2 = arith.constant 0 : i32
    %5 = arith.cmpi eq, %arg2, %c0_i32_2 : i32
    %6 = arith.extui %5 : i1 to i32
    %c0_i32_3 = arith.constant 0 : i32
    %7 = arith.cmpi ne, %6, %c0_i32_3 : i32
    scf.if %7 {
      %cst_12 = arith.constant 0.000000e+00 : f32
      %16 = vector.broadcast %cst_12 : f32 to vector<2x4xf32>
      %c0_13 = arith.constant 0 : index
      %c0_14 = arith.constant 0 : index
      %17 = vector.load %arg7[%c0_13, %c0_14] : memref<2x4xf32, #tpu.memory_space<vmem>>, vector<2x4xf32>
      tpu.vector_store %arg7[%c0_13, %c0_14], %16 {strides = array<i32>} : memref<2x4xf32, #tpu.memory_space<vmem>>, vector<2x4xf32>,
    } else {
    }
    %c0 = arith.constant 0 : index
    %c0_4 = arith.constant 0 : index
    %c0_5 = arith.constant 0 : index
    %8 = vector.load %arg3[%c0, %c0_4, %c0_5] : memref<2x4x256xf32, #tpu.memory_space<vmem>>, vector<2x4x256xf32>
    %c0_6 = arith.constant 0 : index
    %c0_7 = arith.constant 0 : index
    %9 = vector.load %arg7[%c0_6, %c0_7] : memref<2x4xf32, #tpu.memory_space<vmem>>, vector<2x4xf32>
    %cst = arith.constant dense<0.000000e+00> : vector<2x4xf32>
    %10 = vector.multi_reduction <add>, %8, %cst [2] : vector<2x4x256xf32> to vector<2x4xf32>
    %11 = arith.addf %9, %10 : vector<2x4xf32>
    %c0_8 = arith.constant 0 : index
    %c0_9 = arith.constant 0 : index
    %12 = vector.load %arg7[%c0_8, %c0_9] : memref<2x4xf32, #tpu.memory_space<vmem>>, vector<2x4xf32>
    tpu.vector_store %arg7[%c0_8, %c0_9], %11 {strides = array<i32>} : memref<2x4xf32, #tpu.memory_space<vmem>>, vector<2x4xf32>,
    %c0_i32_10 = arith.constant 0 : i32
    %13 = arith.cmpi eq, %arg2, %c0_i32_10 : i32
    %14 = arith.extui %13 : i1 to i32
    %c0_i32_11 = arith.constant 0 : i32
    %15 = arith.cmpi ne, %14, %c0_i32_11 : i32
    scf.if %15 {
      %c0_12 = arith.constant 0 : index
      %c0_13 = arith.constant 0 : index
      %16 = vector.load %arg7[%c0_12, %c0_13] : memref<2x4xf32, #tpu.memory_space<vmem>>, vector<2x4xf32>
      %cst_14 = arith.constant 3.906250e-03 : f32
      %17 = vector.broadcast %cst_14 : f32 to vector<2x4xf32>
      %18 = arith.mulf %16, %17 : vector<2x4xf32>
      %19 = arith.truncf %18 : vector<2x4xf32> to vector<2x4xbf16>
      %c0_15 = arith.constant 0 : index
      %c0_16 = arith.constant 0 : index
      %20 = vector.load %arg6[%c0_15, %c0_16] : memref<2x512xf32, #tpu.memory_space<vmem>>, vector<2x512xf32>
      %c0_17 = arith.constant 0 : index
      %c0_18 = arith.constant 0 : index
      %21 = vector.load %arg4[%c0_17, %c0_18] : memref<4x512xbf16, #tpu.memory_space<vmem>>, vector<4x512xbf16>
      %cst_19 = arith.constant dense<0.000000e+00> : vector<2x512xf32>
      %22 = tpu.matmul %19, %21, %cst_19 {dimension_numbers = #tpu.dot_dimension_numbers<[1], [0], [0], [1], [0, 0, 1, 1], [], []>} : vector<2x4xbf16>, vector<4x512xbf16>, vector<2x512xf32> -> vector<2x512xf32>
      %23 = arith.addf %20, %22 : vector<2x512xf32>
      %c0_20 = arith.constant 0 : index
      %c0_21 = arith.constant 0 : index
      %24 = vector.load %arg6[%c0_20, %c0_21] : memref<2x512xf32, #tpu.memory_space<vmem>>, vector<2x512xf32>
      tpu.vector_store %arg6[%c0_20, %c0_21], %23 {strides = array<i32>} : memref<2x512xf32, #tpu.memory_space<vmem>>, vector<2x512xf32>,
    } else {
    }
    return
  }
  func.func @transform_0(%arg0: i32, %arg1: i32, %arg2: i32) -> (i32, i32, i32) {
    %c0_i32 = arith.constant 0 : i32
    return %arg0, %arg1, %arg2 : i32, i32, i32
  }
  func.func @transform_1(%arg0: i32, %arg1: i32, %arg2: i32) -> (i32, i32) {
    %c0_i32 = arith.constant 0 : i32
    %c0_i32_0 = arith.constant 0 : i32
    return %arg1, %c0_i32 : i32, i32
  }
  func.func @transform_2(%arg0: i32, %arg1: i32, %arg2: i32) -> (i32, i32) {
    %c0_i32 = arith.constant 0 : i32
    %c0_i32_0 = arith.constant 0 : i32
    %c0_i32_1 = arith.constant 0 : i32
    return %c0_i32, %c0_i32_0 : i32, i32
  }
  func.func @transform_3(%arg0: i32, %arg1: i32, %arg2: i32) -> (i32, i32) {
    %c0_i32 = arith.constant 0 : i32
    %c0_i32_0 = arith.constant 0 : i32
    return %arg0, %c0_i32 : i32, i32
  }
}

</mosaic_0001>

<bundles_post_ra>
// kernel: senet_vol_forward.1
= control target key start
LH: loop header
LB: loop body
LE: loop exit
PB: predicated region body
PF: predicated region fallthrough
CT: control target
= control target key end

     0   :  { %vm73_vm0 = vcmask 1043456   ;;  %s350_s0 = inlined_call_operand.vmem [shape: f32[2,4,256], index: 0, kind: input, shape index: {}]   ;;  %s351_s1 = inlined_call_operand.vmem [shape: bf16[4,512], index: 1, kind: input, shape index: {}]   ;;  %s352_s2 = inlined_call_operand.vmem [shape: f32[1,512], index: 2, kind: input, shape index: {}]   ;;  %s353_s3 = inlined_call_operand.hbm [shape: f32[2,512], index: 3, kind: output, shape index: {}]  }
   0x1   :  { %v64_v0 = vld [vmem:[%s350_s0] sm:$0xff]  ;;  %v65_v1 = vld [vmem:[%s350_s0 + $0x8] sm:$0xff] }
   0x2   :  { %8 = vsyncpa [#allocation4], 0  ;;  %v69_v2 = vcombine.high %v64_v0, %v64_v0  ;;  %v74_v3 = vsel %vm73_vm0, %v64_v0, 0.0  ;;  %v70_v4 = vcombine.high %v65_v1, %v65_v1  ;;  %v79_v6 = vsel %vm73_vm0, %v65_v1, 0.0  ;;  %v109_v16 = vld [vmem:[%s351_s1] sm:$0xff] }
   0x3   :  { %vm62_vm1 = vcmask 25600   ;;  %v300_v10 = vmov 0.0   ;;  %v24_v11 = vlaneseq  ;;  %v301_v12 = vmov 1983009808   ;;  %v22_v42 = vld [vmem:[%s352_s2] sm:$0xf] }
   0x4   :  { %v75_v5 = vsel %vm73_vm0, %v69_v2, 0.0  ;;  %v80_v7 = vsel %vm73_vm0, %v70_v4, 0.0  ;;  %63 = vst.msk [vmem:[#allocation2] sm:$0x3] %vm62_vm1, %v300_v10  ;;  %v43_v13 = vunpack.c.l.s4 %v301_v12  ;;  %v111_v17 = vcombine.high %v109_v16, %v109_v16  ;;  %s303_s2 = smov [#allocation3]  }
   0x5   :  { %v76_v8 = vadd.f32 %v75_v5, %v74_v3  ;;  %v81_v9 = vadd.f32 %v80_v7, %v79_v6  ;;  %v25_v14 = vshrl.u32 %v24_v11, 7  ;;  %v302_v18 = vmov 0   ;;  %s257_s18 = sshll.u32 %s303_s2, 4  ;;  %s258_s18 = int_to_ptr.vmem [resolvable:$true] %s257_s18 }
   0x6   :  { %v44_v15 = vunpack.c.0.s8 %v43_v13  ;;  %177 = vmatprep.mubr.bf16.mxu0 %v302_v18  ;;  %218 = vmatprep.mubr.bf16.mxu1 %v302_v18  ;;  %vm132_vm2 = vcmask 1041408   ;;  %v87_v26 = vand.u32 127, %v24_v11  ;;  %vm96_vm3 = vcmask 1041409   ;;  %s276_s19 = scalar_lea.vmem %s258_s18, 128  ;;  %p281_p1 = scmp.lt.s32.totalorder %s258_s18, %s258_s18 }
   0x7   :  { %77 = vadd.xlane.f32.xlu0 %v76_v8  ;;  %vm128_vm4 = vcmask 31744   ;;  %v26_v38 = vsub.s32 0, %v25_v14  ;;  %v30_v39 = vsub.s32 1, %v25_v14  ;;  %v34_v40 = vsub.s32 2, %v25_v14  ;;  %p277_p0 = scmp.ne.s32.totalorder %s258_s18, %s276_s19  ;;  %p282_p2 = scmp.lt.s32.totalorder %s276_s19, %s276_s19 }
   0x8   :  { %v47_v19 = vsub.s32 %v44_v15, %v25_v14  ;;  %v90_v28 = vsub.s32 %v87_v26, %v25_v14  ;;  %v38_v41 = vsub.s32 3, %v25_v14 }
   0x9   :  { %v27_v43 = vrot.slane %v22_v42, %v26_v38  ;;  %v31_v44 = vrot.slane %v22_v42, %v30_v39  ;;  %v35_v45 = vrot.slane %v22_v42, %v34_v40  ;;  %p283_p3 = por %p282_p2, %p281_p1 }
   0xa   :  { %v118_v20 = vrot.slane %v109_v16, %v47_v19  ;;  %v125_v21 = vrot.slane %v111_v17, %v47_v19  ;;  %v39_v46 = vrot.slane %v22_v42, %v38_v41 }
   0xb   :  { %82 = vadd.xlane.f32.xlu0 %v81_v9  ;;  %v66_v31 = vld [vmem:[#allocation2] sm:$0x3]  ;;  %v40_v47 = vcombine.low %v27_v43, %v31_v44  ;;  %p284_p4 = pnand %p283_p3, %p277_p0 }
   0xc   :  { %v126_v22 = vcombine.high %v118_v20, %v118_v20  ;;  %v127_v23 = vcombine.high %v125_v21, %v125_v21  ;;  %v134_v24 = vsel %vm132_vm2, %v118_v20, 0  ;;  %v140_v25 = vsel %vm132_vm2, %v125_v21, 0 }
   0xd   :  { %v41_v48 = vcombine.low %v35_v45, %v39_v46  ;;  %v48_v51 = vrot.slane %v40_v47, %v47_v19 }
   0xe   :  { %265 = vmatprep.subr.msk.bf16.mxu0 %vm132_vm2, %v126_v22  ;;  %267 = vmatprep.subr.msk.bf16.mxu1 %vm132_vm2, %v127_v23 }
   0xf   :  { %146 = vmatpush1.bf16.msra.mxu0 %v134_v24  ;;  %187 = vmatpush1.bf16.msra.mxu1 %v140_v25  ;;  %v55_v52 = vrot.slane %v41_v48, %v47_v19 }
  0x11   :  { %v56_v63 = vcombine.low %v48_v51, %v55_v52 }
  0x94   :  { %v78_v27 = vpop.xlane.xlu0 %77 }
  0x95   :  { %v91_v30 = vrot.slane %v78_v27, %v90_v28 }
  0x98   :  { %v83_v29 = vpop.xlane.xlu0 %82 }
  0x99   :  { %v95_v32 = vrot.slane %v83_v29, %v90_v28 }
  0x9b   :  { %v97_v33 = vsel %vm96_vm3, %v95_v32, %v91_v30 }
  0x9c   :  { %v99_v34 = vadd.f32 %v97_v33, %v66_v31 }
  0x9e   :  { %101 = vst.msk [vmem:[#allocation2] sm:$0x3] %vm62_vm1, %v99_v34 }
  0xa5   :  { %v105_v35 = vld [vmem:[#allocation2] sm:$0x3] }
  0xa6   :  { %v106_v36 = vmul.f32 0.00390625, %v105_v35 }
  0xa8   :  { %v107_v37 = vpack.c.bf16 %v106_v36, %v106_v36 }
  0xaa   :  { %266 = vmatmul.mubr.msk.bf16.vlgmr.msra.gmra.mrb[0].mxu0 %vm128_vm4, %v107_v37  ;;  %268 = vmatmul.mubr.msk.bf16.vlgmr.msra.gmra.mrb[0].mxu1 %vm128_vm4, %v107_v37 }
 0x17d   :  { %v179_v49 = vpop.f32.mrb[0].mxu0  ;;  %v220_v50 = vpop.f32.mrb[0].mxu1 }
 0x17e   :  { %v181_v53 = vpop.f32.mrb[1].mxu0  ;;  %v222_v54 = vpop.f32.mrb[1].mxu1 }
 0x17f   :  { %v231_v55 = vcombine.low %v179_v49, %v181_v53  ;;  %v232_v56 = vcombine.low %v220_v50, %v222_v54  ;;  %v183_v57 = vpop.f32.mrb[2].mxu0  ;;  %v224_v58 = vpop.f32.mrb[2].mxu1 }
 0x180   :  { %v184_v59 = vpop.f32.mrb[3].mxu0  ;;  %v225_v60 = vpop.f32.mrb[3].mxu1 }
 0x181   :  { %v239_v61 = vrot.slane %v231_v55, %v47_v19  ;;  %v246_v62 = vrot.slane %v232_v56, %v47_v19 }
 0x183   :  { %v247_v0 = vcombine.low %v239_v61, %v246_v62 }
 0x185   :  { %v249_v1 = vadd.f32 %v247_v0, %v56_v63 }
 0x187   :  { %250 = vst [vmem:[#allocation3] sm:$0xff] %v249_v1 }
 0x188   :  { %287 = shalt.err (!%p284_p4)
}
 0x189   :  { %s288_s22 = scalar_lea.hbm %s353_s3, 128 }
 0x18a   :  { %p289_p5 = scmp.ne.s32.totalorder %s353_s3, %s288_s22  ;;  %p292_p6 = scmp.lt.u32.totalorder %s288_s22, %s353_s3 }
 0x18c   :  { %p294_p7 = pnand %p292_p6, %p289_p5 }
 0x18e   :  { %297 = shalt.err (!%p294_p7)
}
 0x18f   :  { %260 = dma.vmem_to_hbm [thread:$0]  %s258_s18, 128, %s353_s3, [#allocation4]  }
 0x190   :  { %298 = dma.done.wait [#allocation4], 128  }
 0x191   :  { %299 = vsyncadd [#allocation4], 4294967168 }
 0x192   :  { %264 = vsyncpa [#allocation4], 1 }

</bundles_post_ra>
